<compile_context>
chip_gen: v7x
topology: tpu7x:2x2x1
jax: 0.10.0
libtpu: 0.0.40
codegen_flags: <defaults>
</compile_context>

<pallas_src>
import functools

import jax
import jax.numpy as jnp
from jax.experimental import pallas as pl
from jax.experimental.pallas import tpu as pltpu


def _round_up(x, m):
    return ((x + m - 1) // m) * m


def _pos_encoding_kernel(tok_ref, r_ref, out_ref, *, vocab_count, unk_idx):
    """One grid step processes a tile of TB batch rows.

    tok_ref: [TB, S]    int32  token ids (original, possibly OOV / 0-padded)
    r_ref:   [SVp, Ep]  f32    fused table, R[s*V + v, e] = pos[s, e] * emb[v, e]
                               (zero rows/cols beyond S*V / E)
    out_ref: [TB, Ep]   f32    masked, position-weighted sum over the sequence
    """
    tok = tok_ref[...]                                      # [TB, S] int32
    TB, S = tok.shape
    SVp, Ep = r_ref.shape
    V = vocab_count

    # Mask from the ORIGINAL tokens (matches the PyTorch module: mask precedes UNK swap).
    valid = tok > 0                                         # [TB, S] bool
    # unk_tensor: replace out-of-vocab ids with <UNK>.
    tok = jnp.where(tok >= V, jnp.int32(unk_idx), tok)

    # Flat (position, token) index into the fused table; -1 disables masked slots.
    sidx = jax.lax.broadcasted_iota(jnp.int32, (TB, S), 1)  # sequence position per lane
    fid = jnp.where(valid, tok + sidx * V, jnp.int32(-1))   # [TB, S], values in [0, S*V)

    # One-hot over the flattened (s, v) axis, built 2-D and lane-dense: [TB, SVp].
    # Mask is already folded in (invalid slots have fid == -1 -> never match).
    col = jax.lax.broadcasted_iota(jnp.int32, (TB, SVp), 1)
    oh = col == fid[:, 0:1]
    for s in range(1, S):                                   # small static unroll over S
        oh = jnp.logical_or(oh, col == fid[:, s : s + 1])

    # Single MXU contraction does lookup + pos-weighting + sum over the sequence.
    out_ref[...] = jax.lax.dot_general(
        oh.astype(jnp.float32), r_ref[...],
        dimension_numbers=(((1,), (0,)), ((), ())),
        preferred_element_type=jnp.float32)                 # [TB, Ep]


def position_encoding_pool(tokens, emb_table, pos_emb_full, unk_idx, tile_b=128):
    """tokens: [B, S] int32 -> [B, E] float32 (masked, position-weighted sum over S)."""
    B, S = tokens.shape
    V, E = emb_table.shape

    Ep = _round_up(E, 128)                                  # lane-dense output / table cols
    SV = S * V
    SVp = _round_up(SV, 128)                                # lane-dense contraction (K) dim

    # Fused position x embedding table: R[s*V + v, e] = pos[s, e] * emb[v, e].
    # TODO(synk): for large vocabularies (V*E not VMEM-resident) switch to an
    # HBM-resident table with a DMA row-gather instead of this one-hot matmul.
    pos = pos_emb_full[:S].astype(jnp.float32)              # [S, E]
    R = (pos[:, None, :] * emb_table.astype(jnp.float32)[None, :, :]).reshape(SV, E)
    Rp = jnp.pad(R, ((0, SVp - SV), (0, Ep - E)))           # [SVp, Ep]

    # Batch tile: large (128) for realistic B, shrunk (multiple of 8) for tiny B.
    tb = _round_up(min(tile_b, B), 8)
    Bp = _round_up(B, tb)
    tok_p = jnp.pad(tokens.astype(jnp.int32), ((0, Bp - B), (0, 0)))  # pads are token 0 -> masked

    out = pl.pallas_call(
        functools.partial(_pos_encoding_kernel, vocab_count=V, unk_idx=unk_idx),
        out_shape=jax.ShapeDtypeStruct((Bp, Ep), jnp.float32),
        grid_spec=pltpu.PrefetchScalarGridSpec(
            num_scalar_prefetch=0,
            grid=(Bp // tb,),
            in_specs=[
                pl.BlockSpec((tb, S), lambda i: (i, 0)),        # token tile per grid step
                pl.BlockSpec((SVp, Ep), lambda i: (0, 0)),      # fused table (grid-invariant)
            ],
            out_specs=pl.BlockSpec((tb, Ep), lambda i: (i, 0)),  # lane-dense output tile
        ),
        compiler_params=pltpu.CompilerParams(
            dimension_semantics=("parallel",)),
    )(tok_p, Rp)
    return out[:B, :E]


def get_pos_embedding(max_in_seq, embed):
    """out[j, k] = 1 - j/L - k/E * (1 - 2j/L)   (float division, as in the module)."""
    j = jnp.arange(max_in_seq, dtype=jnp.float32)[:, None]
    k = jnp.arange(embed, dtype=jnp.float32)[None, :]
    return 1.0 - j / max_in_seq - k / embed * (1.0 - 2.0 * j / max_in_seq)


def _reference(tokens, emb_table, pos_emb_full, unk_idx):
    V, E = emb_table.shape
    tok = jnp.where(tokens >= V, unk_idx, tokens)
    emb = emb_table[tok]                                     # [B, S, E]
    mask = (tokens > 0).astype(jnp.float32)[:, :, None]      # mask on ORIGINAL tokens
    pos = pos_emb_full[: tokens.shape[1]][None]              # [1, S, E]
    return jnp.sum(emb * pos * mask, axis=1)


if __name__ == "__main__":
    # "args"/"vocab" stand-ins (deterministic, synthetic).
    vocab_count = 32
    unk_idx = 1                 # vocab.w2i['<UNK>']
    embed = 32                  # args.embed
    max_in_seq = 16             # args.max_in_seq

    key = jax.random.PRNGKey(0)
    k_emb, k_src, k_qry, k_big = jax.random.split(key, 4)

    # nn.Embedding default init ~ N(0, 1), built deterministically in-script.
    emb_table = jax.random.normal(k_emb, (vocab_count, embed), dtype=jnp.float32)
    pos_emb_full = get_pos_embedding(max_in_seq, embed)

    # sources: [batch*context, src_seq], queries: [batch, qry_seq]
    # Values in [0, vocab_count + 4) to exercise UNK replacement; zeros exercise the mask.
    sources = jax.random.randint(k_src, (4, 10), 0, vocab_count + 4, dtype=jnp.int32)
    queries = jax.random.randint(k_qry, (2, 6), 0, vocab_count + 4, dtype=jnp.int32)

    src_simil = position_encoding_pool(sources, emb_table, pos_emb_full, unk_idx)
    q_simil = position_encoding_pool(queries, emb_table, pos_emb_full, unk_idx)

    # Extra check exercising a multi-step grid (grid=3) and batch padding.
    big = jax.random.randint(k_big, (20, 10), 0, vocab_count + 4, dtype=jnp.int32)
    big_simil = position_encoding_pool(big, emb_table, pos_emb_full, unk_idx, tile_b=8)

    jax.block_until_ready((src_simil, q_simil, big_simil))

    # Correctness check against a pure-JAX reference of the PyTorch forward.
    ref_src = _reference(sources, emb_table, pos_emb_full, unk_idx)
    ref_q = _reference(queries, emb_table, pos_emb_full, unk_idx)
    ref_big = _reference(big, emb_table, pos_emb_full, unk_idx)
    assert src_simil.shape == (4, embed) and q_simil.shape == (2, embed)
    assert jnp.allclose(src_simil, ref_src, atol=1e-5, rtol=1e-5)
    assert jnp.allclose(q_simil, ref_q, atol=1e-5, rtol=1e-5)
    assert jnp.allclose(big_simil, ref_big, atol=1e-5, rtol=1e-5)

    print("KERNEL_OK")
</pallas_src>

<mosaic_0001>
module attributes {stable_mosaic.version = 11 : i64} {
  func.func @_pos_encoding_kernel(%arg0: i32, %arg1: memref<8x10xi32, #tpu.memory_space<vmem>>, %arg2: memref<384x128xf32, #tpu.memory_space<vmem>>, %arg3: memref<8x128xf32, #tpu.memory_space<vmem>>) attributes {dimension_semantics = [#tpu.dimension_semantics<parallel>], iteration_bounds = array<i64: 1>, scalar_prefetch = 0 : i64, scratch_operands = 0 : i64, tpu.core_type = #tpu.core_type<tc>, window_params = [{transform_indices = @transform_0, window_bounds = array<i64: 8, 10>}, {pipeline_mode = #tpu.pipeline_mode<synchronous>, transform_indices = @transform_1, window_bounds = array<i64: 384, 128>}, {transform_indices = @transform_2, window_bounds = array<i64: 8, 128>}]} {
    %c0 = arith.constant 0 : index
    %c0_0 = arith.constant 0 : index
    %0 = vector.load %arg1[%c0, %c0_0] : memref<8x10xi32, #tpu.memory_space<vmem>>, vector<8x10xi32>
    %c0_i32 = arith.constant 0 : i32
    %1 = vector.broadcast %c0_i32 : i32 to vector<8x10xi32>
    %2 = arith.cmpi sgt, %0, %1 : vector<8x10xi32>
    %c32_i32 = arith.constant 32 : i32
    %3 = vector.broadcast %c32_i32 : i32 to vector<8x10xi32>
    %4 = arith.cmpi sge, %0, %3 : vector<8x10xi32>
    %c1_i32 = arith.constant 1 : i32
    %5 = vector.broadcast %c1_i32 : i32 to vector<8x10xi32>
    %6 = arith.select %4, %5, %0 : vector<8x10xi1>, vector<8x10xi32>
    %7 = tpu.iota {dimensions = array<i32: 1>} : vector<8x10xi32>
    %c32_i32_1 = arith.constant 32 : i32
    %8 = vector.broadcast %c32_i32_1 : i32 to vector<8x10xi32>
    %9 = arith.muli %7, %8 : vector<8x10xi32>
    %10 = arith.addi %6, %9 : vector<8x10xi32>
    %c-1_i32 = arith.constant -1 : i32
    %11 = vector.broadcast %c-1_i32 : i32 to vector<8x10xi32>
    %12 = arith.select %2, %10, %11 : vector<8x10xi1>, vector<8x10xi32>
    %13 = tpu.iota {dimensions = array<i32: 1>} : vector<8x384xi32>
    %14 = vector.extract_strided_slice %12 {offsets = [0, 0], sizes = [8, 1], strides = [1, 1]} : vector<8x10xi32> to vector<8x1xi32>
    %15 = vector.broadcast %14 : vector<8x1xi32> to vector<8x384xi32>
    %16 = arith.cmpi eq, %13, %15 : vector<8x384xi32>
    %17 = vector.extract_strided_slice %12 {offsets = [0, 1], sizes = [8, 1], strides = [1, 1]} : vector<8x10xi32> to vector<8x1xi32>
    %18 = vector.broadcast %17 : vector<8x1xi32> to vector<8x384xi32>
    %19 = arith.cmpi eq, %13, %18 : vector<8x384xi32>
    %20 = arith.ori %16, %19 : vector<8x384xi1>
    %21 = vector.extract_strided_slice %12 {offsets = [0, 2], sizes = [8, 1], strides = [1, 1]} : vector<8x10xi32> to vector<8x1xi32>
    %22 = vector.broadcast %21 : vector<8x1xi32> to vector<8x384xi32>
    %23 = arith.cmpi eq, %13, %22 : vector<8x384xi32>
    %24 = arith.ori %20, %23 : vector<8x384xi1>
    %25 = vector.extract_strided_slice %12 {offsets = [0, 3], sizes = [8, 1], strides = [1, 1]} : vector<8x10xi32> to vector<8x1xi32>
    %26 = vector.broadcast %25 : vector<8x1xi32> to vector<8x384xi32>
    %27 = arith.cmpi eq, %13, %26 : vector<8x384xi32>
    %28 = arith.ori %24, %27 : vector<8x384xi1>
    %29 = vector.extract_strided_slice %12 {offsets = [0, 4], sizes = [8, 1], strides = [1, 1]} : vector<8x10xi32> to vector<8x1xi32>
    %30 = vector.broadcast %29 : vector<8x1xi32> to vector<8x384xi32>
    %31 = arith.cmpi eq, %13, %30 : vector<8x384xi32>
    %32 = arith.ori %28, %31 : vector<8x384xi1>
    %33 = vector.extract_strided_slice %12 {offsets = [0, 5], sizes = [8, 1], strides = [1, 1]} : vector<8x10xi32> to vector<8x1xi32>
    %34 = vector.broadcast %33 : vector<8x1xi32> to vector<8x384xi32>
    %35 = arith.cmpi eq, %13, %34 : vector<8x384xi32>
    %36 = arith.ori %32, %35 : vector<8x384xi1>
    %37 = vector.extract_strided_slice %12 {offsets = [0, 6], sizes = [8, 1], strides = [1, 1]} : vector<8x10xi32> to vector<8x1xi32>
    %38 = vector.broadcast %37 : vector<8x1xi32> to vector<8x384xi32>
    %39 = arith.cmpi eq, %13, %38 : vector<8x384xi32>
    %40 = arith.ori %36, %39 : vector<8x384xi1>
    %41 = vector.extract_strided_slice %12 {offsets = [0, 7], sizes = [8, 1], strides = [1, 1]} : vector<8x10xi32> to vector<8x1xi32>
    %42 = vector.broadcast %41 : vector<8x1xi32> to vector<8x384xi32>
    %43 = arith.cmpi eq, %13, %42 : vector<8x384xi32>
    %44 = arith.ori %40, %43 : vector<8x384xi1>
    %45 = vector.extract_strided_slice %12 {offsets = [0, 8], sizes = [8, 1], strides = [1, 1]} : vector<8x10xi32> to vector<8x1xi32>
    %46 = vector.broadcast %45 : vector<8x1xi32> to vector<8x384xi32>
    %47 = arith.cmpi eq, %13, %46 : vector<8x384xi32>
    %48 = arith.ori %44, %47 : vector<8x384xi1>
    %49 = vector.extract_strided_slice %12 {offsets = [0, 9], sizes = [8, 1], strides = [1, 1]} : vector<8x10xi32> to vector<8x1xi32>
    %50 = vector.broadcast %49 : vector<8x1xi32> to vector<8x384xi32>
    %51 = arith.cmpi eq, %13, %50 : vector<8x384xi32>
    %52 = arith.ori %48, %51 : vector<8x384xi1>
    %53 = arith.extui %52 : vector<8x384xi1> to vector<8x384xi32>
    %54 = arith.sitofp %53 : vector<8x384xi32> to vector<8x384xf32>
    %c0_2 = arith.constant 0 : index
    %c0_3 = arith.constant 0 : index
    %55 = vector.load %arg2[%c0_2, %c0_3] : memref<384x128xf32, #tpu.memory_space<vmem>>, vector<384x128xf32>
    %cst = arith.constant dense<0.000000e+00> : vector<8x128xf32>
    %56 = tpu.matmul %54, %55, %cst {dimension_numbers = #tpu.dot_dimension_numbers<[1], [0], [0], [1], [0, 0, 1, 1], [], []>} : vector<8x384xf32>, vector<384x128xf32>, vector<8x128xf32> -> vector<8x128xf32>
    %c0_4 = arith.constant 0 : index
    %c0_5 = arith.constant 0 : index
    %57 = vector.load %arg3[%c0_4, %c0_5] : memref<8x128xf32, #tpu.memory_space<vmem>>, vector<8x128xf32>
    tpu.vector_store %arg3[%c0_4, %c0_5], %56 {strides = array<i32>} : memref<8x128xf32, #tpu.memory_space<vmem>>, vector<8x128xf32>,
    return
  }
  func.func @transform_0(%arg0: i32) -> (i32, i32) {
    %c0_i32 = arith.constant 0 : i32
    %c0_i32_0 = arith.constant 0 : i32
    return %arg0, %c0_i32 : i32, i32
  }
  func.func @transform_1(%arg0: i32) -> (i32, i32) {
    %c0_i32 = arith.constant 0 : i32
    %c0_i32_0 = arith.constant 0 : i32
    %c0_i32_1 = arith.constant 0 : i32
    return %c0_i32, %c0_i32_0 : i32, i32
  }
  func.func @transform_2(%arg0: i32) -> (i32, i32) {
    %c0_i32 = arith.constant 0 : i32
    %c0_i32_0 = arith.constant 0 : i32
    return %arg0, %c0_i32 : i32, i32
  }
}

</mosaic_0001>

<bundles_post_ra>
// kernel: tpu_custom_call.1
= control target key start
LH: loop header
LB: loop body
LE: loop exit
PB: predicated region body
PF: predicated region fallthrough
CT: control target
= control target key end

     0   :  { %7 = vsyncpa [#allocation3], 0  ;;  %s739_s0 = inlined_call_operand.hbm [shape: s32[8,10], index: 0, kind: input, shape index: {}]   ;;  %s740_s1 = inlined_call_operand.hbm [shape: f32[384,128], index: 1, kind: input, shape index: {}]   ;;  %s741_s2 = inlined_call_operand.hbm [shape: f32[8,128], index: 2, kind: output, shape index: {}]  }
   0x1   :  { %8 = vsyncpa [#allocation6], 0 }
   0x2   :  { %9 = vsyncpa [#allocation4], 0  ;;  %s594_s9 = smov [#allocation2]   ;;  %s595_s11 = smov [#allocation5]  }
   0x3   :  { %s16_s10 = sshll.u32 %s594_s9, 4  ;;  %s25_s12 = sshll.u32 %s595_s11, 4  ;;  %s17_s10 = int_to_ptr.vmem [resolvable:$true] %s16_s10  ;;  %s627_s12 = int_to_ptr.vmem [resolvable:$true] %s25_s12 }
   0x4   :  { %s522_s15 = scalar_lea.hbm %s739_s0, 128 }
   0x5   :  { %p523_p0 = scmp.ne.s32.totalorder %s739_s0, %s522_s15  ;;  %p526_p1 = scmp.lt.u32.totalorder %s522_s15, %s739_s0 }
   0x7   :  { %p528_p2 = pnand %p526_p1, %p523_p0 }
   0x9   :  { %531 = shalt.err (!%p528_p2)
}
   0xa   :  { %s532_s20 = scalar_lea.vmem %s17_s10, 128  ;;  %p537_p4 = scmp.lt.s32.totalorder %s17_s10, %s17_s10 }
   0xb   :  { %p533_p3 = scmp.ne.s32.totalorder %s17_s10, %s532_s20  ;;  %p538_p5 = scmp.lt.s32.totalorder %s532_s20, %s532_s20 }
   0xd   :  { %p539_p6 = por %p538_p5, %p537_p4 }
   0xf   :  { %p540_p7 = pnand %p539_p6, %p533_p3 }
  0x11   :  { %543 = shalt.err (!%p540_p7)
}
  0x12   :  { %19 = dma.hbm_to_vmem [thread:$0]  %s739_s0, 128, %s17_s10, [#allocation3]  }
  0x13   :  { %s544_s25 = scalar_lea.hbm %s740_s1, 6144 }
  0x14   :  { %p545_p8 = scmp.ne.s32.totalorder %s740_s1, %s544_s25  ;;  %p548_p9 = scmp.lt.u32.totalorder %s544_s25, %s740_s1 }
  0x16   :  { %p550_p10 = pnand %p548_p9, %p545_p8 }
  0x18   :  { %553 = shalt.err (!%p550_p10)
}
  0x19   :  { %s554_s30 = scalar_lea.vmem %s627_s12, 6144  ;;  %p559_p12 = scmp.lt.s32.totalorder %s627_s12, %s627_s12 }
  0x1a   :  { %p555_p11 = scmp.ne.s32.totalorder %s627_s12, %s554_s30  ;;  %p560_p13 = scmp.lt.s32.totalorder %s554_s30, %s554_s30 }
  0x1c   :  { %p561_p0 = por %p560_p13, %p559_p12 }
  0x1e   :  { %p562_p1 = pnand %p561_p0, %p555_p11 }
  0x20   :  { %565 = shalt.err (!%p562_p1)
}
  0x21   :  { %s596_s0 = smov 128   ;;  %s597_s3 = smov 8  }
  0x22   :  { %31 = dma.hbm_to_vmem [thread:$0]  %s740_s1, 6144, %s627_s12, [#allocation6], %s596_s0, %s596_s0, %s597_s3  }
  0x23   :  { %588 = dma.done.wait [#allocation3], 128  }
  0x24   :  { %589 = vsyncadd [#allocation3], 4294967168 }
  0x25   :  { %590 = dma.done.wait [#allocation6], 6144  }
  0x26   :  { %591 = vsyncadd [#allocation6], 4294961152  ;;  %v42_v0 = vlaneseq  ;;  %v598_v1 = vmov 2   ;;  %v599_v2 = vmov 0   ;;  %v600_v4 = vmov 0.0|0.0   ;;  %v38_v6 = vld [vmem:[#allocation2] sm:$0xff] }
  0x27   :  { %513 = vset.pattern.permute.xlu1 %v598_v1  ;;  %511 = vset.pattern.permute.xlu0 %v599_v2  ;;  %v158_v7 = vld [vmem:[#allocation5 + $0x80] sm:$0xff]  ;;  %v159_v8 = vld [vmem:[#allocation5 + $0x88] sm:$0xff]  ;;  %vm40_vm0 = vcmp.ge.s32.totalorder %v38_v6, 32  ;;  %vm39_vm1 = vcmp.gt.s32.totalorder %v38_v6, 0  ;;  %v160_v18 = vld [vmem:[#allocation5 + $0x90] sm:$0xff]  ;;  %v601_v28 = vmov 3  }
  0x28   :  { %v658_v3 = vand.u32 127, %v42_v0  ;;  %469 = vmatprep.subr.bf16.mxu1 %v600_v4  ;;  %v437_v9 = vpack.c.bf16 %v159_v8, %v158_v7  ;;  %v174_v10 = vld [vmem:[#allocation5 + $0x100] sm:$0xff]  ;;  %v175_v11 = vld [vmem:[#allocation5 + $0x108] sm:$0xff]  ;;  %v41_v13 = vsel %vm40_vm0, 1, %v38_v6  ;;  %v161_v19 = vld [vmem:[#allocation5 + $0x98] sm:$0xff]  ;;  %v602_v29 = vmov 1  }
  0x29   :  { %v142_v12 = vld [vmem:[#allocation5] sm:$0xff]  ;;  %v470_v14 = vpack.c.bf16 %v175_v11, %v174_v10  ;;  %v143_v15 = vld [vmem:[#allocation5 + $0x8] sm:$0xff]  ;;  %v176_v20 = vld [vmem:[#allocation5 + $0x110] sm:$0xff]  ;;  %v441_v22 = vpack.c.bf16 %v161_v19, %v160_v18  ;;  %v603_v39 = vmov 4   ;;  %v604_v40 = vmov 5   ;;  %s611_s1 = smov [#allocation7]  }
  0x2a   :  { %v44_v5 = vmul.u32 32, %v658_v3  ;;  %438 = vmatprep.subr.bf16.mxu0 %v437_v9  ;;  %v439_v17 = vpack.c.bf16 %v143_v15, %v142_v12  ;;  %v177_v23 = vld [vmem:[#allocation5 + $0x118] sm:$0xff]  ;;  %v144_v24 = vld [vmem:[#allocation5 + $0x10] sm:$0xff]  ;;  %v162_v30 = vld [vmem:[#allocation5 + $0xa0] sm:$0xff]  ;;  %v605_v49 = vmov 6   ;;  %v606_v50 = vmov 8  }
  0x2b   :  { %471 = vmatpush3.bf16.msra.mxu1 %v470_v14  ;;  %v145_v25 = vld [vmem:[#allocation5 + $0x18] sm:$0xff]  ;;  %v473_v26 = vpack.c.bf16 %v177_v23, %v176_v20  ;;  %v163_v31 = vld [vmem:[#allocation5 + $0xa8] sm:$0xff]  ;;  %v178_v32 = vld [vmem:[#allocation5 + $0x120] sm:$0xff]  ;;  %v607_v55 = vmov 7   ;;  %v608_v60 = vmov 9   ;;  %vm609_vm2 = vmmov 0  }
  0x2c   :  { %v45_v16 = vadd.s32 %v44_v5, %v41_v13  ;;  %440 = vmatpush3.bf16.msra.mxu0 %v439_v17  ;;  %472 = vmatprep.subr.bf16.mxu1 %v600_v4  ;;  %v443_v27 = vpack.c.bf16 %v145_v25, %v144_v24  ;;  %v445_v33 = vpack.c.bf16 %v163_v31, %v162_v30  ;;  %v179_v34 = vld [vmem:[#allocation5 + $0x128] sm:$0xff]  ;;  %v146_v35 = vld [vmem:[#allocation5 + $0x20] sm:$0xff]  ;;  %v164_v41 = vld [vmem:[#allocation5 + $0xb0] sm:$0xff]  ;;  %v610_v17 = vmov 0.0   ;;  %s337_s6 = sshll.u32 %s611_s1, 4  ;;  %s338_s6 = int_to_ptr.vmem [resolvable:$true] %s337_s6 }
  0x2d   :  { %442 = vmatprep.subr.bf16.mxu0 %v441_v22  ;;  %v147_v36 = vld [vmem:[#allocation5 + $0x28] sm:$0xff]  ;;  %v476_v37 = vpack.c.bf16 %v179_v34, %v178_v32  ;;  %v165_v42 = vld [vmem:[#allocation5 + $0xb8] sm:$0xff]  ;;  %v180_v43 = vld [vmem:[#allocation5 + $0x130] sm:$0xff]  ;;  %434 = vmatprep.mubr.msk.f32.mxu1 %vm609_vm2, %v610_v17  ;;  %v683_v31 = vadd.s32 128, %v658_v3  ;;  %v686_v32 = vadd.s32 256, %v658_v3  ;;  %s566_s7 = scalar_lea.vmem %s338_s6, 128  ;;  %p571_p3 = scmp.lt.s32.totalorder %s338_s6, %s338_s6 }
  0x2e   :  { %v662_v21 = vsel %vm39_vm1, %v45_v16, 4294967295  ;;  %v447_v38 = vpack.c.bf16 %v147_v36, %v146_v35  ;;  %v449_v44 = vpack.c.bf16 %v165_v42, %v164_v41  ;;  %v181_v45 = vld [vmem:[#allocation5 + $0x138] sm:$0xff]  ;;  %v148_v47 = vld [vmem:[#allocation5 + $0x30] sm:$0xff]  ;;  %v166_v52 = vld [vmem:[#allocation5 + $0xc0] sm:$0xff]  ;;  %p567_p2 = scmp.ne.s32.totalorder %s338_s6, %s566_s7  ;;  %p572_p4 = scmp.lt.s32.totalorder %s566_s7, %s566_s7 }
  0x2f   :  { %65 = vperm.xlu1 %513, %v662_v21   ;;  %50 = vperm.xlu0 %511, %v662_v21   ;;  %v479_v46 = vpack.c.bf16 %v181_v45, %v180_v43  ;;  %v149_v48 = vld [vmem:[#allocation5 + $0x38] sm:$0xff]  ;;  %v167_v53 = vld [vmem:[#allocation5 + $0xc8] sm:$0xff]  ;;  %v182_v54 = vld [vmem:[#allocation5 + $0x140] sm:$0xff] }
  0x30   :  { %474 = vmatpush3.bf16.msra.mxu1 %v473_v26  ;;  %444 = vmatpush3.bf16.msra.mxu0 %v443_v27  ;;  %v451_v51 = vpack.c.bf16 %v149_v48, %v148_v47  ;;  %v453_v56 = vpack.c.bf16 %v167_v53, %v166_v52  ;;  %v183_v57 = vld [vmem:[#allocation5 + $0x148] sm:$0xff]  ;;  %v150_v58 = vld [vmem:[#allocation5 + $0x40] sm:$0xff]  ;;  %v168_v63 = vld [vmem:[#allocation5 + $0xd0] sm:$0xff]  ;;  %p573_p5 = por %p572_p4, %p571_p3 }
  0x31   :  { %475 = vmatprep.subr.bf16.mxu1 %v600_v4  ;;  %446 = vmatprep.subr.bf16.mxu0 %v445_v33  ;;  %v151_v59 = vld [vmem:[#allocation5 + $0x48] sm:$0xff]  ;;  %v482_v61 = vpack.c.bf16 %v183_v57, %v182_v54  ;;  %v169_v0 = vld [vmem:[#allocation5 + $0xd8] sm:$0xff]  ;;  %v184_v1 = vld [vmem:[#allocation5 + $0x150] sm:$0xff] }
  0x32   :  { %v455_v62 = vpack.c.bf16 %v151_v59, %v150_v58  ;;  %v457_v2 = vpack.c.bf16 %v169_v0, %v168_v63  ;;  %v185_v5 = vld [vmem:[#allocation5 + $0x158] sm:$0xff]  ;;  %v152_v6 = vld [vmem:[#allocation5 + $0x50] sm:$0xff]  ;;  %v170_v10 = vld [vmem:[#allocation5 + $0xe0] sm:$0xff]  ;;  %p574_p6 = pnand %p573_p5, %p567_p2 }
  0x33   :  { %514 = vset.pattern.permute.xlu1 %v601_v28  ;;  %512 = vset.pattern.permute.xlu0 %v602_v29  ;;  %v153_v7 = vld [vmem:[#allocation5 + $0x58] sm:$0xff]  ;;  %v485_v8 = vpack.c.bf16 %v185_v5, %v184_v1  ;;  %v171_v11 = vld [vmem:[#allocation5 + $0xe8] sm:$0xff]  ;;  %v186_v12 = vld [vmem:[#allocation5 + $0x160] sm:$0xff] }
  0x34   :  { %74 = vperm.xlu1 %514, %v662_v21   ;;  %56 = vperm.xlu0 %512, %v662_v21   ;;  %v459_v9 = vpack.c.bf16 %v153_v7, %v152_v6  ;;  %v461_v13 = vpack.c.bf16 %v171_v11, %v170_v10  ;;  %v187_v14 = vld [vmem:[#allocation5 + $0x168] sm:$0xff]  ;;  %v154_v15 = vld [vmem:[#allocation5 + $0x60] sm:$0xff]  ;;  %v172_v20 = vld [vmem:[#allocation5 + $0xf0] sm:$0xff] }
  0x35   :  { %477 = vmatpush3.bf16.msra.mxu1 %v476_v37  ;;  %448 = vmatpush3.bf16.msra.mxu0 %v447_v38  ;;  %v155_v16 = vld [vmem:[#allocation5 + $0x68] sm:$0xff]  ;;  %v488_v18 = vpack.c.bf16 %v187_v14, %v186_v12  ;;  %v188_v22 = vld [vmem:[#allocation5 + $0x170] sm:$0xff]  ;;  %v189_v24 = vld [vmem:[#allocation5 + $0x178] sm:$0xff]  ;;  %v742_v37 = vmov 0 }
  0x36   :  { %478 = vmatprep.subr.bf16.mxu1 %v600_v4  ;;  %450 = vmatprep.subr.bf16.mxu0 %v449_v44  ;;  %v463_v19 = vpack.c.bf16 %v155_v16, %v154_v15  ;;  %v156_v25 = vld [vmem:[#allocation5 + $0x70] sm:$0xff]  ;;  %v157_v26 = vld [vmem:[#allocation5 + $0x78] sm:$0xff]  ;;  %v491_v27 = vpack.c.bf16 %v189_v24, %v188_v22 }
  0x37   :  { %v467_v28 = vpack.c.bf16 %v157_v26, %v156_v25 }
  0x38   :  { %515 = vset.pattern.permute.xlu1 %v603_v39  ;;  %516 = vset.pattern.permute.xlu0 %v604_v40 }
  0x39   :  { %83 = vperm.xlu1 %515, %v662_v21   ;;  %92 = vperm.xlu0 %516, %v662_v21  }
  0x3a   :  { %480 = vmatpush3.bf16.msra.mxu1 %v479_v46  ;;  %452 = vmatpush3.bf16.msra.mxu0 %v451_v51 }
  0x3b   :  { %481 = vmatprep.subr.bf16.mxu1 %v600_v4  ;;  %454 = vmatprep.subr.bf16.mxu0 %v453_v56 }
  0x3d   :  { %517 = vset.pattern.permute.xlu1 %v605_v49  ;;  %519 = vset.pattern.permute.xlu0 %v606_v50 }
  0x3e   :  { %101 = vperm.xlu1 %517, %v662_v21   ;;  %119 = vperm.xlu0 %519, %v662_v21  }
  0x3f   :  { %483 = vmatpush3.bf16.msra.mxu1 %v482_v61  ;;  %456 = vmatpush3.bf16.msra.mxu0 %v455_v62 }
  0x40   :  { %484 = vmatprep.subr.bf16.mxu1 %v600_v4  ;;  %458 = vmatprep.subr.bf16.mxu0 %v457_v2 }
  0x42   :  { %518 = vset.pattern.permute.xlu1 %v607_v55  ;;  %521 = vset.pattern.permute.xlu0 %v608_v60 }
  0x43   :  { %110 = vperm.xlu1 %518, %v662_v21   ;;  %486 = vmatpush3.bf16.msra.mxu1 %v485_v8 }
  0x44   :  { %460 = vmatpush3.bf16.msra.mxu0 %v459_v9  ;;  %487 = vmatprep.subr.bf16.mxu1 %v600_v4 }
  0x45   :  { %462 = vmatprep.subr.bf16.mxu0 %v461_v13 }
  0x47   :  { %520 = vset.pattern.permute.xlu1 %v608_v60  ;;  %489 = vmatpush3.bf16.msra.mxu1 %v488_v18 }
  0x48   :  { %128 = vperm.xlu1 %520, %v662_v21   ;;  %v173_v21 = vld [vmem:[#allocation5 + $0xf8] sm:$0xff]  ;;  %464 = vmatpush3.bf16.msra.mxu0 %v463_v19 }
  0x49   :  { %v465_v23 = vpack.c.bf16 %v173_v21, %v172_v20  ;;  %490 = vmatprep.subr.bf16.mxu1 %v600_v4 }
  0x4b   :  { %466 = vmatprep.subr.bf16.mxu0 %v465_v23  ;;  %492 = vmatpush3.bf16.msra.mxu1 %v491_v27 }
  0x4c   :  { %468 = vmatpush3.bf16.msra.mxu0 %v467_v28 }
  0xae   :  { %v66_v29 = vpop.permute.xlu1 %65  ;;  %v51_v30 = vpop.permute.xlu0 %50 }
  0xaf   :  { %vm52_vm3 = vcmp.eq.s32.totalorder %v658_v3, %v51_v30  ;;  %vm53_vm4 = vcmp.eq.s32.totalorder %v683_v31, %v51_v30  ;;  %vm54_vm5 = vcmp.eq.s32.totalorder %v686_v32, %v51_v30  ;;  %vm67_vm11 = vcmp.eq.s32.totalorder %v658_v3, %v66_v29 }
  0xb0   :  { %vm68_vm13 = vcmp.eq.s32.totalorder %v683_v31, %v66_v29  ;;  %vm69_vm15 = vcmp.eq.s32.totalorder %v686_v32, %v66_v29 }
  0xb3   :  { %v75_v33 = vpop.permute.xlu1 %74  ;;  %v57_v34 = vpop.permute.xlu0 %56 }
  0xb4   :  { %vm58_vm6 = vcmp.eq.s32.totalorder %v658_v3, %v57_v34  ;;  %vm59_vm7 = vcmp.eq.s32.totalorder %v683_v31, %v57_v34  ;;  %vm60_vm8 = vcmp.eq.s32.totalorder %v686_v32, %v57_v34  ;;  %vm76_vm1 = vcmp.eq.s32.totalorder %v658_v3, %v75_v33 }
  0xb5   :  { %vm61_vm9 = vmor %vm52_vm3, %vm58_vm6  ;;  %vm77_vm3 = vcmp.eq.s32.totalorder %v683_v31, %v75_v33 }
  0xb6   :  { %vm62_vm10 = vmor %vm53_vm4, %vm59_vm7  ;;  %vm78_vm7 = vcmp.eq.s32.totalorder %v686_v32, %v75_v33 }
  0xb7   :  { %vm63_vm12 = vmor %vm54_vm5, %vm60_vm8 }
  0xb8   :  { %vm70_vm14 = vmor %vm61_vm9, %vm67_vm11  ;;  %v84_v4 = vpop.permute.xlu1 %83  ;;  %v93_v35 = vpop.permute.xlu0 %92 }
  0xb9   :  { %vm71_vm0 = vmor %vm62_vm10, %vm68_vm13  ;;  %vm85_vm4 = vcmp.eq.s32.totalorder %v658_v3, %v84_v4  ;;  %vm86_vm8 = vcmp.eq.s32.totalorder %v683_v31, %v84_v4  ;;  %vm87_vm11 = vcmp.eq.s32.totalorder %v686_v32, %v84_v4  ;;  %vm94_vm13 = vcmp.eq.s32.totalorder %v658_v3, %v93_v35 }
  0xba   :  { %vm72_vm2 = vmor %vm63_vm12, %vm69_vm15  ;;  %vm95_vm15 = vcmp.eq.s32.totalorder %v683_v31, %v93_v35 }
  0xbb   :  { %vm79_vm6 = vmor %vm70_vm14, %vm76_vm1  ;;  %vm96_vm14 = vcmp.eq.s32.totalorder %v686_v32, %v93_v35 }
  0xbc   :  { %vm80_vm5 = vmor %vm71_vm0, %vm77_vm3 }
  0xbd   :  { %vm81_vm9 = vmor %vm72_vm2, %vm78_vm7  ;;  %v102_v36 = vpop.permute.xlu1 %101  ;;  %v120_v39 = vpop.permute.xlu0 %119 }
  0xbe   :  { %vm88_vm10 = vmor %vm79_vm6, %vm85_vm4  ;;  %vm103_vm3 = vcmp.eq.s32.totalorder %v658_v3, %v102_v36  ;;  %vm105_vm7 = vcmp.eq.s32.totalorder %v686_v32, %v102_v36 }
  0xbf   :  { %vm89_vm12 = vmor %vm80_vm5, %vm86_vm8 }
  0xc0   :  { %vm90_vm1 = vmor %vm81_vm9, %vm87_vm11  ;;  %vm121_vm11 = vcmp.eq.s32.totalorder %v658_v3, %v120_v39 }
  0xc1   :  { %vm97_vm0 = vmor %vm88_vm10, %vm94_vm13  ;;  %vm123_vm13 = vcmp.eq.s32.totalorder %v686_v32, %v120_v39 }
  0xc2   :  { %vm707_vm2 = vmor %vm89_vm12, %vm95_vm15  ;;  %v111_v38 = vpop.permute.xlu1 %110  ;;  %vm104_vm12 = vcmp.eq.s32.totalorder %v683_v31, %v102_v36 }
  0xc3   :  { %v743_v37 = vsel %vm707_vm2, 4294967295, %v742_v37  ;;  %vm99_vm6 = vmor %vm90_vm1, %vm96_vm14  ;;  %vm112_vm4 = vcmp.eq.s32.totalorder %v658_v3, %v111_v38  ;;  %vm114_vm8 = vcmp.eq.s32.totalorder %v686_v32, %v111_v38  ;;  %vm113_vm2 = vcmp.eq.s32.totalorder %v683_v31, %v111_v38 }
  0xc4   :  { %vm106_vm5 = vmor %vm97_vm0, %vm103_vm3  ;;  %vm122_vm14 = vcmp.eq.s32.totalorder %v683_v31, %v120_v39  ;;  %vm744_vm3 = vnez %v743_v37 }
  0xc5   :  { %vm108_vm9 = vmor %vm99_vm6, %vm105_vm7 }
  0xc6   :  { %vm115_vm10 = vmor %vm106_vm5, %vm112_vm4 }
  0xc7   :  { %vm117_vm15 = vmor %vm108_vm9, %vm114_vm8  ;;  %v129_v40 = vpop.permute.xlu1 %128 }
  0xc8   :  { %vm124_vm1 = vmor %vm115_vm10, %vm121_vm11  ;;  %vm131_vm7 = vcmp.eq.s32.totalorder %v683_v31, %v129_v40  ;;  %vm132_vm4 = vcmp.eq.s32.totalorder %v686_v32, %v129_v40  ;;  %vm130_vm8 = vcmp.eq.s32.totalorder %v658_v3, %v129_v40 }
  0xc9   :  { %vm126_vm0 = vmor %vm117_vm15, %vm123_vm13 }
  0xca   :  { %vm107_vm6 = vmor %vm744_vm3, %vm104_vm12 }
  0xcb   :  { %vm116_vm5 = vmor %vm107_vm6, %vm113_vm2 }
  0xcc   :  { %vm125_vm9 = vmor %vm116_vm5, %vm122_vm14 }
  0xcd   :  { %vm134_vm10 = vmor %vm125_vm9, %vm131_vm7 }
  0xce   :  { %v348_v41 = vsel %vm134_vm10, 1.0, %v610_v17  ;;  %vm135_vm11 = vmor %vm126_vm0, %vm132_vm4 }
  0xcf   :  { %254 = vmatprep.mubr.f32.mxu0 %v348_v41  ;;  %v349_v42 = vsel %vm135_vm11, 1.0, %v610_v17  ;;  %vm133_vm13 = vmor %vm124_vm1, %vm130_vm8 }
  0xd0   :  { %435 = vmatmul.mubr.f32.vlgmr.msra.gmra.mrb[0].mxu1 %v349_v42  ;;  %v347_v43 = vsel %vm133_vm13, 1.0, %v610_v17 }
  0xd1   :  { %255 = vmatmul.mubr.f32.vlgmr.msra.gmra.mrb[0].mxu0 %v347_v43 }
 0x1a3   :  { %v326_v44 = vpop.f32.mrb[0].mxu1 }
 0x1a4   :  { %v382_v45 = vpop.f32.mrb[0].mxu0  ;;  %v436_v46 = vpop.f32.mrb[1].mxu1 }
 0x1a5   :  { %v383_v47 = vpop.f32.mrb[1].mxu0 }
 0x1a6   :  { %v384_v3 = vadd.f32 %v383_v47, %v382_v45 }
 0x1a8   :  { %v327_v48 = vadd.f32 %v384_v3, %v326_v44 }
 0x1aa   :  { %330 = vst [vmem:[#allocation7] sm:$0xff] %v327_v48 }
 0x1ab   :  { %577 = shalt.err (!%p574_p6)
}
 0x1ac   :  { %s578_s10 = scalar_lea.hbm %s741_s2, 128 }
 0x1ad   :  { %p579_p7 = scmp.ne.s32.totalorder %s741_s2, %s578_s10  ;;  %p582_p8 = scmp.lt.u32.totalorder %s578_s10, %s741_s2 }
 0x1af   :  { %p584_p9 = pnand %p582_p8, %p579_p7 }
 0x1b1   :  { %587 = shalt.err (!%p584_p9)
}
 0x1b2   :  { %340 = dma.vmem_to_hbm [thread:$0]  %s338_s6, 128, %s741_s2, [#allocation4]  }
 0x1b3   :  { %592 = dma.done.wait [#allocation4], 128  }
 0x1b4   :  { %593 = vsyncadd [#allocation4], 4294967168 }
 0x1b5   :  { %344 = vsyncpa [#allocation3], 1 }
 0x1b6   :  { %345 = vsyncpa [#allocation6], 1 }
 0x1b7   :  { %346 = vsyncpa [#allocation4], 1 }

</bundles_post_ra>
